<compile_context>
chip_gen: v6e
topology: v6e:2x2x1
jax: 0.10.0
libtpu: 0.0.40
codegen_flags: <defaults>
</compile_context>

<pallas_src>
import jax
import jax.numpy as jnp
from jax.experimental import pallas as pl
from jax.experimental.pallas import tpu as pltpu

BN_EPS = 1e-5
LEAKY_SLOPE = 0.01

# --- fixed architecture / packed-parameter layout ---------------------------
IN = 8       # input features
H = 32       # hidden width (both hidden layers)
OUT = 1      # output size (sigmoid head)
LANE = 128   # TPU lane width

# Row offsets inside the single packed (TOTAL_ROWS, 128) parameter array.
# Each block starts on a multiple of 8 rows (sublane alignment).
R_W1 = 0            # rows   0..7  : W1 (8,128),   cols [0,32) used (in,out)
R_B1 = 8            # row    8     : b1 (1,128),   cols [0,32) used
R_W2 = 16           # rows  16..143: W2 (128,128), block [0:32,0:32) used (in,out)
R_B2 = 144          # row  144     : b2 (1,128),   cols [0,32) used
R_W3T = 152         # row  152     : W3^T (1,128), cols [0,32) used
R_B3 = 160          # row  160     : b3 scalar at col 0
TOTAL_ROWS = 168    # 168 * 128 * 4B = 86 KiB (resident in VMEM, single-buffered)


def mlp_kernel(x_ref, p_ref, o_ref):
    """One batch tile: y = sigmoid(L3(leaky(L2(leaky(L1(x))))))  (BN pre-folded).

    Output is written as a lane-dense (1, TB) row.  For a partial last batch
    tile the padded rows flow through exp/sigmoid as well; those lanes of the
    output block fall outside the (1, B) array and are discarded by Pallas.
    """
    x = x_ref[...]                                   # (TB, 8)

    w1 = p_ref[R_W1:R_W1 + IN, :]                    # (8, 128)
    b1 = p_ref[R_B1:R_B1 + 1, :]                     # (1, 128)
    w2 = p_ref[R_W2:R_W2 + LANE, :]                  # (128, 128)
    b2 = p_ref[R_B2:R_B2 + 1, :]                     # (1, 128)
    w3t = p_ref[R_W3T:R_W3T + 1, :]                  # (1, 128)  -- W3 transposed row
    b3 = p_ref[R_B3:R_B3 + 1, 0:1]                   # (1, 1)

    # Layer 1: Linear(8->32) with BN folded in; padded lanes stay exactly 0.
    h = jnp.dot(x, w1, preferred_element_type=jnp.float32) + b1
    h = jnp.where(h >= 0, h, LEAKY_SLOPE * h)

    # Layer 2: Linear(32->32) with BN folded in (zero-padded to 128x128).
    h = jnp.dot(h, w2, preferred_element_type=jnp.float32) + b2
    h = jnp.where(h >= 0, h, LEAKY_SLOPE * h)

    # Output layer: Linear(32->1), computed transposed (q.k^T MXU form):
    #   (1,128) . (TB,128)^T -> (1, TB) lane-dense logit row.
    y = jax.lax.dot_general(w3t, h, (((1,), (1,)), ((), ())),
                            preferred_element_type=jnp.float32) + b3

    # sigmoid(y) = 1 / (1 + exp(-y)); exp + approx reciprocal run on the EUP.
    o_ref[...] = pl.reciprocal(1.0 + jnp.exp(-y), approx=True)


def mlp_forward(x, packed, *, block_b=None):
    """x: (B, IN) float32. packed: (TOTAL_ROWS, LANE) folded/packed params.

    Returns (B, OUT) float32.
    """
    B, F = x.shape
    assert F == IN
    if block_b is None:
        if B <= 256:
            block_b = B                      # single tile; too small to split
        else:
            # >= 2 grid steps (feeds both TensorCores on v7x via the
            # "parallel" axis), tiles capped at 4096 rows and rounded to a
            # multiple of 128 so the lane-dense (1, block_b) output block is
            # legal.  ~10 MiB of VMEM at 4096 rows -> fits every generation
            # with the 32 MiB limit below.
            half = pl.cdiv(B, 2)
            half = pl.cdiv(half, LANE) * LANE
            block_b = min(4096, half)
    n_blocks = pl.cdiv(B, block_b)

    out_row = pl.pallas_call(
        mlp_kernel,
        out_shape=jax.ShapeDtypeStruct((1, B), jnp.float32),
        grid=(n_blocks,),
        in_specs=[
            # Batch tile of the input.
            # TODO(synk): x occupies 8 of 128 lanes in VMEM; repacking it
            #             lane-dense wrapper-side is the next DMA win if input
            #             bandwidth ever becomes the limiter.
            pl.BlockSpec((block_b, F), lambda i: (i, 0)),
            # Packed weights: block-invariant -> resident, single-buffered.
            pl.BlockSpec((TOTAL_ROWS, LANE), lambda i: (0, 0),
                         pipeline_mode=pl.Buffered(1)),
        ],
        out_specs=pl.BlockSpec((1, block_b), lambda i: (0, i)),
        compiler_params=pltpu.CompilerParams(
            dimension_semantics=("parallel",),        # megacore on v7x
            vmem_limit_bytes=32 * 1024 * 1024,        # headroom for 4096-row tiles on v5e
        ),
    )(x, packed)
    # (1, B) -> (B, 1): same element order, effectively free.
    return out_row.reshape(B, OUT)


# --- parameter construction --------------------------------------------------
def init_params(key):
    """PyTorch-style params for Linear(8,32)+BN, Linear(32,32)+BN, Linear(32,1).

    Linear weights are generated in PyTorch layout (out,in) then transposed to
    (in,out). BN params are randomized (not identity) so the fold is actually
    exercised by the reference check."""
    dims = [IN, H, H, OUT]
    keys = jax.random.split(key, 6 * (len(dims) - 1))
    params = {}
    for li in range(len(dims) - 1):
        fan_in, fan_out = dims[li], dims[li + 1]
        bound = 1.0 / jnp.sqrt(fan_in)
        k = keys[6 * li:6 * li + 6]
        w_pt = jax.random.uniform(k[0], (fan_out, fan_in),
                                  minval=-bound, maxval=bound, dtype=jnp.float32)
        b_pt = jax.random.uniform(k[1], (fan_out,),
                                  minval=-bound, maxval=bound, dtype=jnp.float32)
        idx = li + 1
        params[f"w{idx}"] = jnp.transpose(w_pt)                # (in, out)
        params[f"b{idx}"] = b_pt.reshape(1, fan_out)           # (1, out)
        if li < len(dims) - 2:  # hidden layers have BatchNorm1d
            params[f"g{idx}"] = jax.random.uniform(k[2], (1, fan_out),
                                                   minval=0.5, maxval=1.5, dtype=jnp.float32)
            params[f"be{idx}"] = 0.1 * jax.random.normal(k[3], (1, fan_out), dtype=jnp.float32)
            params[f"m{idx}"] = 0.1 * jax.random.normal(k[4], (1, fan_out), dtype=jnp.float32)
            params[f"v{idx}"] = jax.random.uniform(k[5], (1, fan_out),
                                                   minval=0.5, maxval=1.5, dtype=jnp.float32)
    return params


def fold_and_pack(params):
    """Fold inference-mode BatchNorm into the preceding Linear and pack every
    remaining parameter into one zero-padded (TOTAL_ROWS, LANE) f32 array.
    The final Linear's weight is stored transposed (as a (1,128) row) so the
    kernel can produce a lane-dense (1, TB) output."""
    s1 = params["g1"] * jax.lax.rsqrt(params["v1"] + BN_EPS)            # (1,H)
    w1f = params["w1"] * s1                                             # (IN,H)
    b1f = (params["b1"] - params["m1"]) * s1 + params["be1"]            # (1,H)

    s2 = params["g2"] * jax.lax.rsqrt(params["v2"] + BN_EPS)
    w2f = params["w2"] * s2                                             # (H,H)
    b2f = (params["b2"] - params["m2"]) * s2 + params["be2"]            # (1,H)

    w3, b3 = params["w3"], params["b3"]                                 # (H,OUT),(1,OUT)

    packed = jnp.zeros((TOTAL_ROWS, LANE), jnp.float32)
    packed = packed.at[R_W1:R_W1 + IN, :H].set(w1f)
    packed = packed.at[R_B1, :H].set(b1f[0])
    packed = packed.at[R_W2:R_W2 + H, :H].set(w2f)
    packed = packed.at[R_B2, :H].set(b2f[0])
    packed = packed.at[R_W3T, :H].set(w3[:, 0])                         # W3^T row
    packed = packed.at[R_B3, 0].set(b3[0, 0])
    return packed


def reference_forward(x, params):
    """Pure-JAX reference of the ORIGINAL (unfolded) math, for a sanity check."""
    h = x @ params["w1"] + params["b1"]
    h = (h - params["m1"]) * jax.lax.rsqrt(params["v1"] + BN_EPS) * params["g1"] + params["be1"]
    h = jnp.where(h >= 0, h, LEAKY_SLOPE * h)
    h = h @ params["w2"] + params["b2"]
    h = (h - params["m2"]) * jax.lax.rsqrt(params["v2"] + BN_EPS) * params["g2"] + params["be2"]
    h = jnp.where(h >= 0, h, LEAKY_SLOPE * h)
    y = h @ params["w3"] + params["b3"]
    return jax.nn.sigmoid(y)


if __name__ == "__main__":
    key = jax.random.PRNGKey(0)
    k_param, k_x, k_x2 = jax.random.split(key, 3)
    params = init_params(k_param)
    packed = fold_and_pack(params)

    # Small demo batch (single tile).
    BATCH = 8
    x = jax.random.normal(k_x, (BATCH, IN), dtype=jnp.float32)
    y = mlp_forward(x, packed)
    y = jax.block_until_ready(y)
    y_ref = reference_forward(x, params)
    assert y.shape == (BATCH, OUT)
    # Tolerance accounts for the approx (EUP) reciprocal in the sigmoid.
    assert jnp.allclose(y, y_ref, atol=2e-3, rtol=2e-3), "Pallas output mismatch vs reference"

    # Slightly larger batch: exercises the tiled grid path incl. a partial
    # last tile (384 rows -> two 256-row blocks, second one partially valid).
    BATCH2 = 384
    x2 = jax.random.normal(k_x2, (BATCH2, IN), dtype=jnp.float32)
    y2 = mlp_forward(x2, packed)
    y2 = jax.block_until_ready(y2)
    y2_ref = reference_forward(x2, params)
    assert y2.shape == (BATCH2, OUT)
    assert jnp.allclose(y2, y2_ref, atol=2e-3, rtol=2e-3), "Pallas output mismatch vs reference (tiled)"

    print("KERNEL_OK")
</pallas_src>

<mosaic_0001>
module attributes {stable_mosaic.version = 11 : i64} {
  func.func @mlp_kernel(%arg0: i32, %arg1: memref<8x8xf32, #tpu.memory_space<vmem>>, %arg2: memref<168x128xf32, #tpu.memory_space<vmem>>, %arg3: memref<1x8xf32, #tpu.memory_space<vmem>>) attributes {dimension_semantics = [#tpu.dimension_semantics<parallel>], iteration_bounds = array<i64: 1>, scalar_prefetch = 0 : i64, scratch_operands = 0 : i64, tpu.core_type = #tpu.core_type<tc>, window_params = [{transform_indices = @transform_0, window_bounds = array<i64: 8, 8>}, {pipeline_mode = #tpu.pipeline_mode<synchronous>, transform_indices = @transform_1, window_bounds = array<i64: 168, 128>}, {transform_indices = @transform_2, window_bounds = array<i64: 1, 8>}]} {
    %c0 = arith.constant 0 : index
    %c0_0 = arith.constant 0 : index
    %0 = vector.load %arg1[%c0, %c0_0] : memref<8x8xf32, #tpu.memory_space<vmem>>, vector<8x8xf32>
    %c0_1 = arith.constant 0 : index
    %c0_2 = arith.constant 0 : index
    %1 = vector.load %arg2[%c0_1, %c0_2] : memref<168x128xf32, #tpu.memory_space<vmem>>, vector<8x128xf32>
    %c8 = arith.constant 8 : index
    %c0_3 = arith.constant 0 : index
    %2 = vector.load %arg2[%c8, %c0_3] : memref<168x128xf32, #tpu.memory_space<vmem>>, vector<1x128xf32>
    %c16 = arith.constant 16 : index
    %c0_4 = arith.constant 0 : index
    %3 = vector.load %arg2[%c16, %c0_4] : memref<168x128xf32, #tpu.memory_space<vmem>>, vector<128x128xf32>
    %c144 = arith.constant 144 : index
    %c0_5 = arith.constant 0 : index
    %4 = vector.load %arg2[%c144, %c0_5] : memref<168x128xf32, #tpu.memory_space<vmem>>, vector<1x128xf32>
    %c152 = arith.constant 152 : index
    %c0_6 = arith.constant 0 : index
    %5 = vector.load %arg2[%c152, %c0_6] : memref<168x128xf32, #tpu.memory_space<vmem>>, vector<1x128xf32>
    %c160 = arith.constant 160 : index
    %c0_7 = arith.constant 0 : index
    %6 = vector.load %arg2[%c160, %c0_7] : memref<168x128xf32, #tpu.memory_space<vmem>>, vector<1x1xf32>
    %cst = arith.constant dense<0.000000e+00> : vector<8x128xf32>
    %7 = tpu.matmul %0, %1, %cst {dimension_numbers = #tpu.dot_dimension_numbers<[1], [0], [0], [1], [0, 0, 1, 1], [], []>} : vector<8x8xf32>, vector<8x128xf32>, vector<8x128xf32> -> vector<8x128xf32>
    %8 = vector.broadcast %2 : vector<1x128xf32> to vector<8x128xf32>
    %9 = arith.addf %7, %8 : vector<8x128xf32>
    %cst_8 = arith.constant 0.000000e+00 : f32
    %10 = vector.broadcast %cst_8 : f32 to vector<8x128xf32>
    %11 = arith.cmpf oge, %9, %10 : vector<8x128xf32>
    %cst_9 = arith.constant 0.00999999977 : f32
    %12 = vector.broadcast %cst_9 : f32 to vector<8x128xf32>
    %13 = arith.mulf %12, %9 : vector<8x128xf32>
    %14 = arith.select %11, %9, %13 : vector<8x128xi1>, vector<8x128xf32>
    %cst_10 = arith.constant dense<0.000000e+00> : vector<8x128xf32>
    %15 = tpu.matmul %14, %3, %cst_10 {dimension_numbers = #tpu.dot_dimension_numbers<[1], [0], [0], [1], [0, 0, 1, 1], [], []>} : vector<8x128xf32>, vector<128x128xf32>, vector<8x128xf32> -> vector<8x128xf32>
    %16 = vector.broadcast %4 : vector<1x128xf32> to vector<8x128xf32>
    %17 = arith.addf %15, %16 : vector<8x128xf32>
    %cst_11 = arith.constant 0.000000e+00 : f32
    %18 = vector.broadcast %cst_11 : f32 to vector<8x128xf32>
    %19 = arith.cmpf oge, %17, %18 : vector<8x128xf32>
    %cst_12 = arith.constant 0.00999999977 : f32
    %20 = vector.broadcast %cst_12 : f32 to vector<8x128xf32>
    %21 = arith.mulf %20, %17 : vector<8x128xf32>
    %22 = arith.select %19, %17, %21 : vector<8x128xi1>, vector<8x128xf32>
    %cst_13 = arith.constant dense<0.000000e+00> : vector<1x8xf32>
    %23 = tpu.matmul %5, %22, %cst_13 {dimension_numbers = #tpu.dot_dimension_numbers<[1], [1], [0], [0], [0, 0, 1, 0], [], []>} : vector<1x128xf32>, vector<8x128xf32>, vector<1x8xf32> -> vector<1x8xf32>
    %24 = vector.broadcast %6 : vector<1x1xf32> to vector<1x8xf32>
    %25 = arith.addf %23, %24 : vector<1x8xf32>
    %cst_14 = arith.constant 0.000000e+00 : f32
    %26 = vector.broadcast %cst_14 : f32 to vector<1x8xf32>
    %27 = arith.subf %26, %25 : vector<1x8xf32>
    %28 = math.exp %27 : vector<1x8xf32>
    %cst_15 = arith.constant 1.000000e+00 : f32
    %29 = vector.broadcast %cst_15 : f32 to vector<1x8xf32>
    %30 = arith.addf %29, %28 : vector<1x8xf32>
    %31 = tpu.reciprocal %30 {approx = true} : vector<1x8xf32> -> vector<1x8xf32>
    %c0_16 = arith.constant 0 : index
    %c0_17 = arith.constant 0 : index
    %32 = vector.load %arg3[%c0_16, %c0_17] : memref<1x8xf32, #tpu.memory_space<vmem>>, vector<1x8xf32>
    tpu.vector_store %arg3[%c0_16, %c0_17], %31 {strides = array<i32>} : memref<1x8xf32, #tpu.memory_space<vmem>>, vector<1x8xf32>,
    return
  }
  func.func @transform_0(%arg0: i32) -> (i32, i32) {
    %c0_i32 = arith.constant 0 : i32
    %c0_i32_0 = arith.constant 0 : i32
    return %arg0, %c0_i32 : i32, i32
  }
  func.func @transform_1(%arg0: i32) -> (i32, i32) {
    %c0_i32 = arith.constant 0 : i32
    %c0_i32_0 = arith.constant 0 : i32
    %c0_i32_1 = arith.constant 0 : i32
    return %c0_i32, %c0_i32_0 : i32, i32
  }
  func.func @transform_2(%arg0: i32) -> (i32, i32) {
    %c0_i32 = arith.constant 0 : i32
    %c0_i32_0 = arith.constant 0 : i32
    return %c0_i32, %arg0 : i32, i32
  }
}

</mosaic_0001>

<bundles_post_ra>
// kernel: tpu_custom_call.1
= control target key start
LH: loop header
LB: loop body
LE: loop exit
PB: predicated region body
PF: predicated region fallthrough
CT: control target
= control target key end

     0   :  { %7 = vsyncpa [#allocation3], 0  ;;  %s499_s0 = inlined_call_operand.hbm [shape: f32[8,8], index: 0, kind: input, shape index: {}]   ;;  %s500_s1 = inlined_call_operand.hbm [shape: f32[168,128], index: 1, kind: input, shape index: {}]   ;;  %s501_s2 = inlined_call_operand.hbm [shape: f32[1,8], index: 2, kind: output, shape index: {}]  }
   0x1   :  { %8 = vsyncpa [#allocation6], 0 }
   0x2   :  { %9 = vsyncpa [#allocation4], 0  ;;  %s464_s9 = smov [#allocation2]   ;;  %s465_s11 = smov [#allocation5]  }
   0x3   :  { %s16_s10 = sshll.u32 %s464_s9, 4  ;;  %s25_s12 = sshll.u32 %s465_s11, 4  ;;  %s17_s10 = int_to_ptr.vmem [resolvable:$true] %s16_s10  ;;  %s26_s12 = int_to_ptr.vmem [resolvable:$true] %s25_s12 }
   0x4   :  { %s406_s13 = scalar_lea.vmem %s17_s10, 128  ;;  %p411_p1 = scmp.lt.s32.totalorder %s17_s10, %s17_s10 }
   0x5   :  { %p407_p0 = scmp.ne.s32.totalorder %s17_s10, %s406_s13  ;;  %p412_p2 = scmp.lt.s32.totalorder %s406_s13, %s406_s13 }
   0x7   :  { %p413_p3 = por %p412_p2, %p411_p1 }
   0x9   :  { %p414_p4 = pnand %p413_p3, %p407_p0 }
   0xb   :  { %417 = shalt.err (!%p414_p4)
}
   0xc   :  { %19 = dma.hbm_to_vmem [thread:$0]  %s499_s0, 128, %s17_s10, [#allocation3]  }
   0xd   :  { %s426_s16 = scalar_lea.vmem %s26_s12, 2688  ;;  %p431_p6 = scmp.lt.s32.totalorder %s26_s12, %s26_s12 }
   0xe   :  { %p427_p5 = scmp.ne.s32.totalorder %s26_s12, %s426_s16  ;;  %p432_p7 = scmp.lt.s32.totalorder %s426_s16, %s426_s16 }
  0x10   :  { %p433_p8 = por %p432_p7, %p431_p6 }
  0x12   :  { %p434_p9 = pnand %p433_p8, %p427_p5 }
  0x14   :  { %437 = shalt.err (!%p434_p9)
}
  0x15   :  { %s466_s17 = smov 128   ;;  %s467_s18 = smov 8  }
  0x16   :  { %31 = dma.hbm_to_vmem [thread:$0]  %s500_s1, 2688, %s26_s12, [#allocation6], %s466_s17, %s466_s17, %s467_s18  }
  0x17   :  { %458 = dma.done.wait [#allocation3], 128  }
  0x18   :  { %459 = vsyncadd [#allocation3], 4294967168 }
  0x19   :  { %460 = dma.done.wait [#allocation6], 2688  }
  0x1a   :  { %461 = vsyncadd [#allocation6], 4294964608  ;;  %v468_v0 = vmov 0.0   ;;  %vm469_vm0 = vmmov 0   ;;  %vm64_vm1 = vcmask 64512   ;;  %v39_v1 = vld [vmem:[#allocation5] sm:$0xff] }
  0x1b   :  { %340 = vmatprep.subr.mxu0 %v468_v0  ;;  %342 = vmatprep.mubr.msk.f32.mxu0 %vm469_vm0, %v468_v0  ;;  %v38_v2 = vld [vmem:[#allocation2] sm:$0xff]  ;;  %v56_v3 = vld [vmem:[#allocation5 + $0x88] sm:$0xff]  ;;  %v55_v4 = vld [vmem:[#allocation5 + $0x80] sm:$0xff]  ;;  %v470_v26 = vmov 0   ;;  %s471_s0 = smov [#allocation7]   ;;  %vm298_vm4 = vcmask 57344  }
  0x1c   :  { %345 = vmatprep.subr.mxu1 %v468_v0  ;;  %377 = vmatprep.mubr.msk.f32.mxu1 %vm469_vm0, %v468_v0  ;;  %v54_v5 = vld [vmem:[#allocation5 + $0x78] sm:$0xff]  ;;  %v53_v6 = vld [vmem:[#allocation5 + $0x70] sm:$0xff]  ;;  %v52_v7 = vld [vmem:[#allocation5 + $0x68] sm:$0xff]  ;;  %s306_s1 = sshll.u32 %s471_s0, 4  ;;  %s307_s1 = int_to_ptr.vmem [resolvable:$true] %s306_s1 }
  0x1d   :  { %341 = vmatpush3.msra.mxu0 %v39_v1  ;;  %346 = vmatpush3.msra.mxu1 %v56_v3  ;;  %v51_v8 = vld [vmem:[#allocation5 + $0x60] sm:$0xff]  ;;  %v50_v9 = vld [vmem:[#allocation5 + $0x58] sm:$0xff]  ;;  %v49_v10 = vld [vmem:[#allocation5 + $0x50] sm:$0xff]  ;;  %s438_s21 = scalar_lea.vmem %s307_s1, 16  ;;  %s442_s22 = scalar_lea.vmem %s307_s1, 32 }
  0x1e   :  { %343 = vmatmul.mubr.msk.f32.vlgmr.msra.gmra.mxu0 %vm64_vm1, %v38_v2  ;;  %347 = vmatprep.subr.mxu1 %v468_v0  ;;  %v48_v11 = vld [vmem:[#allocation5 + $0x48] sm:$0xff]  ;;  %v47_v12 = vld [vmem:[#allocation5 + $0x40] sm:$0xff]  ;;  %v46_v13 = vld [vmem:[#allocation5 + $0x38] sm:$0xff]  ;;  %p439_p10 = scmp.ne.s32.totalorder %s307_s1, %s438_s21  ;;  %p443_p11 = scmp.lt.s32.totalorder %s307_s1, %s307_s1 }
  0x1f   :  { %348 = vmatpush3.msra.mxu1 %v55_v4  ;;  %380 = vmatprep.subr.mxu0 %v468_v0  ;;  %v45_v14 = vld [vmem:[#allocation5 + $0x30] sm:$0xff]  ;;  %v44_v15 = vld [vmem:[#allocation5 + $0x28] sm:$0xff]  ;;  %v43_v16 = vld [vmem:[#allocation5 + $0x20] sm:$0xff]  ;;  %p444_p12 = scmp.lt.s32.totalorder %s442_s22, %s438_s21 }
  0x20   :  { %349 = vmatprep.subr.mxu1 %v468_v0  ;;  %382 = vmatprep.mubr.msk.f32.mxu0 %vm469_vm0, %v468_v0  ;;  %v42_v17 = vld [vmem:[#allocation5 + $0x18] sm:$0xff]  ;;  %v41_v18 = vld [vmem:[#allocation5 + $0x10] sm:$0xff]  ;;  %v316_v19 = vld [vmem:[#allocation5 + $0x8] ss:$0 sm:$0xff] }
  0x21   :  { %350 = vmatpush3.msra.mxu1 %v54_v5  ;;  %v59_v25 = vld [vmem:[#allocation5 + $0xa0] sm:$0x1]  ;;  %393 = vset.pattern.permute.xlu0 %v470_v26  ;;  %v318_v27 = vld [vmem:[#allocation5 + $0x90] ss:$0 sm:$0xff]  ;;  %v58_v33 = vld [vmem:[#allocation5 + $0x98] sm:$0x1]  ;;  %p445_p13 = por %p444_p12, %p443_p11 }
  0x22   :  { %351 = vmatprep.subr.mxu1 %v468_v0  ;;  %220 = vperm.xlu0 %393, %v59_v25  }
  0x23   :  { %352 = vmatpush3.msra.mxu1 %v53_v6  ;;  %p446_p0 = pnand %p445_p13, %p439_p10 }
  0x24   :  { %353 = vmatprep.subr.mxu1 %v468_v0 }
  0x25   :  { %354 = vmatpush3.msra.mxu1 %v52_v7 }
  0x26   :  { %355 = vmatprep.subr.mxu1 %v468_v0 }
  0x27   :  { %356 = vmatpush3.msra.mxu1 %v51_v8 }
  0x28   :  { %357 = vmatprep.subr.mxu1 %v468_v0 }
  0x29   :  { %358 = vmatpush3.msra.mxu1 %v50_v9 }
  0x2a   :  { %359 = vmatprep.subr.mxu1 %v468_v0 }
  0x2b   :  { %360 = vmatpush3.msra.mxu1 %v49_v10 }
  0x2c   :  { %361 = vmatprep.subr.mxu1 %v468_v0 }
  0x2d   :  { %362 = vmatpush3.msra.mxu1 %v48_v11 }
  0x2e   :  { %363 = vmatprep.subr.mxu1 %v468_v0 }
  0x2f   :  { %364 = vmatpush3.msra.mxu1 %v47_v12 }
  0x30   :  { %365 = vmatprep.subr.mxu1 %v468_v0 }
  0x31   :  { %366 = vmatpush3.msra.mxu1 %v46_v13 }
  0x32   :  { %367 = vmatprep.subr.mxu1 %v468_v0 }
  0x33   :  { %368 = vmatpush3.msra.mxu1 %v45_v14 }
  0x34   :  { %369 = vmatprep.subr.mxu1 %v468_v0 }
  0x35   :  { %370 = vmatpush3.msra.mxu1 %v44_v15 }
  0x36   :  { %371 = vmatprep.subr.mxu1 %v468_v0 }
  0x37   :  { %372 = vmatpush3.msra.mxu1 %v43_v16 }
  0x38   :  { %373 = vmatprep.subr.mxu1 %v468_v0 }
  0x39   :  { %374 = vmatpush3.msra.mxu1 %v42_v17 }
  0x3a   :  { %375 = vmatprep.subr.mxu1 %v468_v0 }
  0x3b   :  { %376 = vmatpush3.msra.mxu1 %v41_v18 }
  0x9d   :  { %v221_v34 = vpop.permute.xlu0 %220 }
  0xde   :  { %v134_v20 = vpop.f32.mrf.mxu0 }
  0xdf   :  { %v135_v21 = vadd.f32 %v316_v19, %v134_v20 }
  0xe0   :  { %v344_v22 = vpop.f32.mrf.mxu0 }
  0xe1   :  { %v139_v23 = vmul.f32 0.01, %v135_v21  ;;  %vm138_vm2 = vcmp.ge.f32.partialorder %v135_v21, 0.0 }
  0xe3   :  { %v140_v24 = vsel %vm138_vm2, %v135_v21, %v139_v23 }
  0xe4   :  { %378 = vmatmul.mubr.f32.vlgmr.msra.gmra.mxu1 %v140_v24 }
 0x1a4   :  { %v211_v28 = vpop.f32.mrf.mxu1 }
 0x1a5   :  { %v212_v29 = vadd.f32 %v318_v27, %v211_v28 }
 0x1a6   :  { %v379_v30 = vpop.f32.mrf.mxu1 }
 0x1a7   :  { %vm215_vm3 = vcmp.ge.f32.partialorder %v212_v29, 0.0  ;;  %v216_v31 = vmul.f32 0.01, %v212_v29 }
 0x1a9   :  { %v217_v32 = vsel %vm215_vm3, %v212_v29, %v216_v31 }
 0x1aa   :  { %381 = vmatpush3.xpose.msra.mxu0 %v217_v32 }
 0x1ad   :  { %383 = vmatmul.mubr.f32.vlgmr.msra.gmra.mxu0 %v58_v33 }
 0x26d   :  { %v289_v35 = vpop.f32.mrf.mxu0 }
 0x26e   :  { %v290_v36 = vadd.f32 %v289_v35, %v221_v34 }
 0x26f   :  { %v384_v37 = vpop.f32.mrf.mxu0 }
 0x270   :  { %v293_v38 = vsub.f32 0.0, %v290_v36 }
 0x272   :  { %v294_v39 = vmul.f32 1.442695, %v293_v38 }
 0x274   :  { %394 = vpow2.f32 %v294_v39 }
 0x281   :  { %v395_v40 = vpop.eup %394 }
 0x282   :  { %v296_v41 = vadd.f32 1.0, %v395_v40 }
 0x284   :  { %396 = vrcp.f32 %v296_v41 }
 0x291   :  { %v397_v42 = vpop.eup %396 }
 0x292   :  { %299 = vst.msk [vmem:[#allocation7] sm:$0x1] %vm298_vm4, %v397_v42 }
 0x293   :  { %449 = shalt.err (!%p446_p0)
}
 0x294   :  { %309 = dma.vmem_to_hbm [thread:$0]  %s307_s1, 16, %s501_s2, [#allocation4]  }
 0x295   :  { %462 = dma.done.wait [#allocation4], 16  }
 0x296   :  { %463 = vsyncadd [#allocation4], 4294967280 }
 0x297   :  { %313 = vsyncpa [#allocation3], 1 }
 0x298   :  { %314 = vsyncpa [#allocation6], 1 }
 0x299   :  { %315 = vsyncpa [#allocation4], 1 }

</bundles_post_ra>
